<compile_context>
chip_gen: v6e
topology: v6e:2x2x1
jax: 0.10.0
libtpu: 0.0.40
codegen_flags: <defaults>
</compile_context>

<pallas_src>
import jax
import jax.numpy as jnp
from jax.experimental import pallas as pl
from jax.experimental.pallas import tpu as pltpu


def _kl_kernel(preds_ref, target_ref, out_ref,
               m_p_ref, m_t_ref, psum_ref, tsum_ref, a_ref):
    h = pl.program_id(1)                       # hidden-chunk (reduction) axis

    @pl.when(h == 0)
    def _():
        m_p_ref[...] = jnp.full_like(m_p_ref, -jnp.inf)
        m_t_ref[...] = jnp.full_like(m_t_ref, -jnp.inf)
        psum_ref[...] = jnp.zeros_like(psum_ref)
        tsum_ref[...] = jnp.zeros_like(tsum_ref)
        a_ref[...] = jnp.zeros_like(a_ref)

    p = preds_ref[...].astype(jnp.float32)
    t = target_ref[...].astype(jnp.float32)
    # TODO(synk): on v7x (EUP-bound with f32 inputs) consider bf16 exp operands.

    # Online log-sum-exp for preds: P = sum_j exp(p_j - m_p).
    m_p_new = jnp.maximum(m_p_ref[...], jnp.max(p, axis=-1, keepdims=True))
    psum_ref[...] = (psum_ref[...] * jnp.exp(m_p_ref[...] - m_p_new)
                     + jnp.sum(jnp.exp(p - m_p_new), axis=-1, keepdims=True))
    m_p_ref[...] = m_p_new

    # Online stats for target: T = sum_j exp(t_j - m_t),
    #                          A = sum_j exp(t_j - m_t) * (t_j - p_j).
    m_t_new = jnp.maximum(m_t_ref[...], jnp.max(t, axis=-1, keepdims=True))
    corr = jnp.exp(m_t_ref[...] - m_t_new)
    t_exp = jnp.exp(t - m_t_new)
    tsum_ref[...] = tsum_ref[...] * corr + jnp.sum(t_exp, axis=-1, keepdims=True)
    a_ref[...] = a_ref[...] * corr + jnp.sum(t_exp * (t - p), axis=-1,
                                             keepdims=True)
    m_t_ref[...] = m_t_new

    @pl.when(h == pl.num_programs(1) - 1)
    def _():
        # Per-row KL(softmax(t) || softmax(p)) = A/T + (m_p - m_t) + log P - log T
        inv_t = pl.reciprocal(tsum_ref[...], approx=False)
        out_ref[...] = (a_ref[...] * inv_t
                        + (m_p_ref[...] - m_t_ref[...])
                        + jnp.log(psum_ref[...]) - jnp.log(tsum_ref[...]))


def _tpu_vmem_limit_bytes():
    """Generation-aware scoped-VMEM limit (headroom under physical VMEM)."""
    phys = 128 * 1024 * 1024
    try:
        info = pltpu.get_tpu_info()
        phys = int(getattr(info, "vmem_capacity_bytes", phys))
    except Exception:
        pass
    # 64 MiB on 128-MiB parts (v5e/v6e), 48 MiB on 64-MiB-per-TC parts (v7x).
    return min((phys * 3) // 4, 64 * 1024 * 1024)


def kl_loss_pallas(preds, target, *, max_h_block=None, downcast_to_bf16=False):
    """KL(softmax(target) || softmax(preds)) with 'batchmean' reduction."""
    assert preds.shape == target.shape, (preds.shape, target.shape)
    batch = preds.shape[0]
    hidden = preds.shape[-1]

    preds2d = jnp.reshape(preds, (-1, hidden))      # keep native dtype
    target2d = jnp.reshape(target, (-1, hidden))
    if downcast_to_bf16 and preds2d.dtype == jnp.float32:
        # ~2x HBM-traffic win on bandwidth-bound v5e/v6e; KD-loss accuracy
        # trade-off, off by default to preserve f32 semantics.
        preds2d = preds2d.astype(jnp.bfloat16)
        target2d = target2d.astype(jnp.bfloat16)
    n_rows = preds2d.shape[0]

    elem_bytes = jnp.dtype(preds2d.dtype).itemsize
    pack = {4: 8, 2: 16, 1: 32}.get(elem_bytes, 8)  # sublane minimum per dtype

    vmem_limit = _tpu_vmem_limit_bytes()
    budget = vmem_limit - 8 * 1024 * 1024           # scratch/pipeline headroom
    # Per (row_tile, h_block) element: 2 inputs x 2 double-buffers in native
    # dtype + ~24 B of live f32 temporaries the kernel body materializes.
    bytes_per_elem = 4 * elem_bytes + 24

    # ---- hidden-dim block: full H if even a pack-row tile fits, else tile ----
    full_h = pack * hidden * bytes_per_elem <= budget and (
        max_h_block is None or hidden <= max_h_block)
    if full_h:
        h_block, hidden_padded = hidden, hidden
    else:
        h_block = 2048 if max_h_block is None else max_h_block
        h_block = max(128, (h_block // 128) * 128)
        h_block = min(h_block, -(-hidden // 128) * 128)
        hidden_padded = -(-hidden // h_block) * h_block
    n_h_blocks = hidden_padded // h_block

    # ---- row tile: VMEM budget + ~4 MiB per-input-block DMA sweet spot ----
    rt = min(budget // (h_block * bytes_per_elem),
             (4 * 1024 * 1024) // (h_block * elem_bytes))
    rt = max((rt // pack) * pack, pack)
    rows_padded_min = -(-n_rows // pack) * pack
    # Keep >= 2 row tiles when possible (pipelining overlap + megacore split).
    if rows_padded_min >= 2 * pack:
        rt = min(rt, -(-rows_padded_min // (2 * pack)) * pack)
    row_tile = min(rt, rows_padded_min)

    n_row_tiles = -(-n_rows // row_tile)
    padded_rows = n_row_tiles * row_tile

    # ---- padding ----
    if hidden_padded != hidden:
        # Large negative finite fill: exp(fill - max) == 0 and (t - p) == 0 on
        # padded columns, so they contribute nothing to T, P or A.
        fill = -float(jnp.finfo(preds2d.dtype).max) / 2
        preds2d = jnp.pad(preds2d, ((0, 0), (0, hidden_padded - hidden)),
                          constant_values=fill)
        target2d = jnp.pad(target2d, ((0, 0), (0, hidden_padded - hidden)),
                           constant_values=fill)
    if padded_rows != n_rows:
        # Identical zero rows in both tensors have KL == 0 exactly.
        pad = padded_rows - n_rows
        preds2d = jnp.pad(preds2d, ((0, pad), (0, 0)))
        target2d = jnp.pad(target2d, ((0, pad), (0, 0)))

    in_spec = pl.BlockSpec((row_tile, h_block), lambda i, h: (i, h))

    row_kl = pl.pallas_call(
        _kl_kernel,
        out_shape=jax.ShapeDtypeStruct((padded_rows, 1), jnp.float32),
        grid_spec=pltpu.PrefetchScalarGridSpec(
            num_scalar_prefetch=0,
            grid=(n_row_tiles, n_h_blocks),
            in_specs=[in_spec, in_spec],
            out_specs=pl.BlockSpec((row_tile, 1), lambda i, h: (i, 0)),
            scratch_shapes=[pltpu.VMEM((row_tile, 1), jnp.float32)] * 5,
        ),
        compiler_params=pltpu.CompilerParams(
            dimension_semantics=("parallel", "arbitrary"),
            vmem_limit_bytes=int(vmem_limit),
        ),
    )(preds2d, target2d)

    # 'batchmean': divide the total KL by the size of the FIRST dimension.
    return jnp.sum(row_kl) / jnp.float32(batch)


def kl_loss_ref(preds, target):
    preds = preds.astype(jnp.float32)
    target = target.astype(jnp.float32)
    log_q = jax.nn.log_softmax(preds, axis=-1)
    p = jax.nn.softmax(target, axis=-1)
    log_p = jax.nn.log_softmax(target, axis=-1)
    return jnp.sum(p * (log_p - log_q)) / preds.shape[0]


if __name__ == "__main__":
    key = jax.random.PRNGKey(0)
    k1, k2, k3, k4 = jax.random.split(key, 4)

    # Small shape consistent with the module's forward (logits over last dim).
    B, S, H = 2, 8, 32
    preds = jax.random.normal(k1, (B, S, H), dtype=jnp.float32)
    target = jax.random.normal(k2, (B, S, H), dtype=jnp.float32)

    loss = kl_loss_pallas(preds, target)
    jax.block_until_ready(loss)
    ref = kl_loss_ref(preds, target)
    assert jnp.allclose(loss, ref, rtol=1e-5, atol=1e-5), (loss, ref)

    # Exercise the hidden-tiled (online-softmax) path incl. H and row padding:
    # H=320 forced into 128-wide blocks (padded to 384), 22 rows padded to 32.
    B2, S2, H2 = 2, 11, 320
    preds2 = jax.random.normal(k3, (B2, S2, H2), dtype=jnp.float32)
    target2 = jax.random.normal(k4, (B2, S2, H2), dtype=jnp.float32)
    loss2 = kl_loss_pallas(preds2, target2, max_h_block=128)
    jax.block_until_ready(loss2)
    ref2 = kl_loss_ref(preds2, target2)
    assert jnp.allclose(loss2, ref2, rtol=1e-4, atol=1e-5), (loss2, ref2)

    print("KERNEL_OK")
</pallas_src>

<mosaic_0001>
module attributes {stable_mosaic.version = 11 : i64} {
  func.func @_kl_kernel(%arg0: i32, %arg1: i32, %arg2: memref<8x32xf32, #tpu.memory_space<vmem>>, %arg3: memref<8x32xf32, #tpu.memory_space<vmem>>, %arg4: memref<8x1xf32, #tpu.memory_space<vmem>>, %arg5: memref<8x1xf32, #tpu.memory_space<vmem>>, %arg6: memref<8x1xf32, #tpu.memory_space<vmem>>, %arg7: memref<8x1xf32, #tpu.memory_space<vmem>>, %arg8: memref<8x1xf32, #tpu.memory_space<vmem>>, %arg9: memref<8x1xf32, #tpu.memory_space<vmem>>) attributes {dimension_semantics = [#tpu.dimension_semantics<parallel>, #tpu.dimension_semantics<arbitrary>], iteration_bounds = array<i64: 2, 1>, scalar_prefetch = 0 : i64, scratch_operands = 5 : i64, tpu.core_type = #tpu.core_type<tc>, window_params = [{transform_indices = @transform_0, window_bounds = array<i64: 8, 32>}, {transform_indices = @transform_1, window_bounds = array<i64: 8, 32>}, {transform_indices = @transform_2, window_bounds = array<i64: 8, 1>}]} {
    %c0_i32 = arith.constant 0 : i32
    %0 = arith.cmpi eq, %arg1, %c0_i32 : i32
    %1 = arith.extui %0 : i1 to i32
    %c0_i32_0 = arith.constant 0 : i32
    %2 = arith.cmpi ne, %1, %c0_i32_0 : i32
    scf.if %2 {
      %cst_34 = arith.constant 0xFF800000 : f32
      %50 = vector.broadcast %cst_34 : f32 to vector<8x1xf32>
      %c0_35 = arith.constant 0 : index
      %c0_36 = arith.constant 0 : index
      %51 = vector.load %arg5[%c0_35, %c0_36] : memref<8x1xf32, #tpu.memory_space<vmem>>, vector<8x1xf32>
      tpu.vector_store %arg5[%c0_35, %c0_36], %50 {strides = array<i32>} : memref<8x1xf32, #tpu.memory_space<vmem>>, vector<8x1xf32>,
      %cst_37 = arith.constant 0xFF800000 : f32
      %52 = vector.broadcast %cst_37 : f32 to vector<8x1xf32>
      %c0_38 = arith.constant 0 : index
      %c0_39 = arith.constant 0 : index
      %53 = vector.load %arg6[%c0_38, %c0_39] : memref<8x1xf32, #tpu.memory_space<vmem>>, vector<8x1xf32>
      tpu.vector_store %arg6[%c0_38, %c0_39], %52 {strides = array<i32>} : memref<8x1xf32, #tpu.memory_space<vmem>>, vector<8x1xf32>,
      %cst_40 = arith.constant 0.000000e+00 : f32
      %54 = vector.broadcast %cst_40 : f32 to vector<8x1xf32>
      %c0_41 = arith.constant 0 : index
      %c0_42 = arith.constant 0 : index
      %55 = vector.load %arg7[%c0_41, %c0_42] : memref<8x1xf32, #tpu.memory_space<vmem>>, vector<8x1xf32>
      tpu.vector_store %arg7[%c0_41, %c0_42], %54 {strides = array<i32>} : memref<8x1xf32, #tpu.memory_space<vmem>>, vector<8x1xf32>,
      %cst_43 = arith.constant 0.000000e+00 : f32
      %56 = vector.broadcast %cst_43 : f32 to vector<8x1xf32>
      %c0_44 = arith.constant 0 : index
      %c0_45 = arith.constant 0 : index
      %57 = vector.load %arg8[%c0_44, %c0_45] : memref<8x1xf32, #tpu.memory_space<vmem>>, vector<8x1xf32>
      tpu.vector_store %arg8[%c0_44, %c0_45], %56 {strides = array<i32>} : memref<8x1xf32, #tpu.memory_space<vmem>>, vector<8x1xf32>,
      %cst_46 = arith.constant 0.000000e+00 : f32
      %58 = vector.broadcast %cst_46 : f32 to vector<8x1xf32>
      %c0_47 = arith.constant 0 : index
      %c0_48 = arith.constant 0 : index
      %59 = vector.load %arg9[%c0_47, %c0_48] : memref<8x1xf32, #tpu.memory_space<vmem>>, vector<8x1xf32>
      tpu.vector_store %arg9[%c0_47, %c0_48], %58 {strides = array<i32>} : memref<8x1xf32, #tpu.memory_space<vmem>>, vector<8x1xf32>,
    } else {
    }
    %c0 = arith.constant 0 : index
    %c0_1 = arith.constant 0 : index
    %3 = vector.load %arg2[%c0, %c0_1] : memref<8x32xf32, #tpu.memory_space<vmem>>, vector<8x32xf32>
    %c0_2 = arith.constant 0 : index
    %c0_3 = arith.constant 0 : index
    %4 = vector.load %arg3[%c0_2, %c0_3] : memref<8x32xf32, #tpu.memory_space<vmem>>, vector<8x32xf32>
    %c0_4 = arith.constant 0 : index
    %c0_5 = arith.constant 0 : index
    %5 = vector.load %arg5[%c0_4, %c0_5] : memref<8x1xf32, #tpu.memory_space<vmem>>, vector<8x1xf32>
    %cst = arith.constant dense<0xFF800000> : vector<8xf32>
    %6 = vector.multi_reduction <maximumf>, %3, %cst [1] : vector<8x32xf32> to vector<8xf32>
    %7 = vector.shape_cast %6 : vector<8xf32> to vector<8x1xf32>
    %8 = arith.maximumf %5, %7 : vector<8x1xf32>
    %c0_6 = arith.constant 0 : index
    %c0_7 = arith.constant 0 : index
    %9 = vector.load %arg7[%c0_6, %c0_7] : memref<8x1xf32, #tpu.memory_space<vmem>>, vector<8x1xf32>
    %c0_8 = arith.constant 0 : index
    %c0_9 = arith.constant 0 : index
    %10 = vector.load %arg5[%c0_8, %c0_9] : memref<8x1xf32, #tpu.memory_space<vmem>>, vector<8x1xf32>
    %11 = arith.subf %10, %8 : vector<8x1xf32>
    %12 = math.exp %11 : vector<8x1xf32>
    %13 = arith.mulf %9, %12 : vector<8x1xf32>
    %14 = vector.broadcast %8 : vector<8x1xf32> to vector<8x32xf32>
    %15 = arith.subf %3, %14 : vector<8x32xf32>
    %16 = math.exp %15 : vector<8x32xf32>
    %cst_10 = arith.constant dense<0.000000e+00> : vector<8xf32>
    %17 = vector.multi_reduction <add>, %16, %cst_10 [1] : vector<8x32xf32> to vector<8xf32>
    %18 = vector.shape_cast %17 : vector<8xf32> to vector<8x1xf32>
    %19 = arith.addf %13, %18 : vector<8x1xf32>
    %c0_11 = arith.constant 0 : index
    %c0_12 = arith.constant 0 : index
    %20 = vector.load %arg7[%c0_11, %c0_12] : memref<8x1xf32, #tpu.memory_space<vmem>>, vector<8x1xf32>
    tpu.vector_store %arg7[%c0_11, %c0_12], %19 {strides = array<i32>} : memref<8x1xf32, #tpu.memory_space<vmem>>, vector<8x1xf32>,
    %c0_13 = arith.constant 0 : index
    %c0_14 = arith.constant 0 : index
    %21 = vector.load %arg5[%c0_13, %c0_14] : memref<8x1xf32, #tpu.memory_space<vmem>>, vector<8x1xf32>
    tpu.vector_store %arg5[%c0_13, %c0_14], %8 {strides = array<i32>} : memref<8x1xf32, #tpu.memory_space<vmem>>, vector<8x1xf32>,
    %c0_15 = arith.constant 0 : index
    %c0_16 = arith.constant 0 : index
    %22 = vector.load %arg6[%c0_15, %c0_16] : memref<8x1xf32, #tpu.memory_space<vmem>>, vector<8x1xf32>
    %cst_17 = arith.constant dense<0xFF800000> : vector<8xf32>
    %23 = vector.multi_reduction <maximumf>, %4, %cst_17 [1] : vector<8x32xf32> to vector<8xf32>
    %24 = vector.shape_cast %23 : vector<8xf32> to vector<8x1xf32>
    %25 = arith.maximumf %22, %24 : vector<8x1xf32>
    %c0_18 = arith.constant 0 : index
    %c0_19 = arith.constant 0 : index
    %26 = vector.load %arg6[%c0_18, %c0_19] : memref<8x1xf32, #tpu.memory_space<vmem>>, vector<8x1xf32>
    %27 = arith.subf %26, %25 : vector<8x1xf32>
    %28 = math.exp %27 : vector<8x1xf32>
    %29 = vector.broadcast %25 : vector<8x1xf32> to vector<8x32xf32>
    %30 = arith.subf %4, %29 : vector<8x32xf32>
    %31 = math.exp %30 : vector<8x32xf32>
    %c0_20 = arith.constant 0 : index
    %c0_21 = arith.constant 0 : index
    %32 = vector.load %arg8[%c0_20, %c0_21] : memref<8x1xf32, #tpu.memory_space<vmem>>, vector<8x1xf32>
    %33 = arith.mulf %32, %28 : vector<8x1xf32>
    %cst_22 = arith.constant dense<0.000000e+00> : vector<8xf32>
    %34 = vector.multi_reduction <add>, %31, %cst_22 [1] : vector<8x32xf32> to vector<8xf32>
    %35 = vector.shape_cast %34 : vector<8xf32> to vector<8x1xf32>
    %36 = arith.addf %33, %35 : vector<8x1xf32>
    %c0_23 = arith.constant 0 : index
    %c0_24 = arith.constant 0 : index
    %37 = vector.load %arg8[%c0_23, %c0_24] : memref<8x1xf32, #tpu.memory_space<vmem>>, vector<8x1xf32>
    tpu.vector_store %arg8[%c0_23, %c0_24], %36 {strides = array<i32>} : memref<8x1xf32, #tpu.memory_space<vmem>>, vector<8x1xf32>,
    %c0_25 = arith.constant 0 : index
    %c0_26 = arith.constant 0 : index
    %38 = vector.load %arg9[%c0_25, %c0_26] : memref<8x1xf32, #tpu.memory_space<vmem>>, vector<8x1xf32>
    %39 = arith.mulf %38, %28 : vector<8x1xf32>
    %40 = arith.subf %4, %3 : vector<8x32xf32>
    %41 = arith.mulf %31, %40 : vector<8x32xf32>
    %cst_27 = arith.constant dense<0.000000e+00> : vector<8xf32>
    %42 = vector.multi_reduction <add>, %41, %cst_27 [1] : vector<8x32xf32> to vector<8xf32>
    %43 = vector.shape_cast %42 : vector<8xf32> to vector<8x1xf32>
    %44 = arith.addf %39, %43 : vector<8x1xf32>
    %c0_28 = arith.constant 0 : index
    %c0_29 = arith.constant 0 : index
    %45 = vector.load %arg9[%c0_28, %c0_29] : memref<8x1xf32, #tpu.memory_space<vmem>>, vector<8x1xf32>
    tpu.vector_store %arg9[%c0_28, %c0_29], %44 {strides = array<i32>} : memref<8x1xf32, #tpu.memory_space<vmem>>, vector<8x1xf32>,
    %c0_30 = arith.constant 0 : index
    %c0_31 = arith.constant 0 : index
    %46 = vector.load %arg6[%c0_30, %c0_31] : memref<8x1xf32, #tpu.memory_space<vmem>>, vector<8x1xf32>
    tpu.vector_store %arg6[%c0_30, %c0_31], %25 {strides = array<i32>} : memref<8x1xf32, #tpu.memory_space<vmem>>, vector<8x1xf32>,
    %c0_i32_32 = arith.constant 0 : i32
    %47 = arith.cmpi eq, %arg1, %c0_i32_32 : i32
    %48 = arith.extui %47 : i1 to i32
    %c0_i32_33 = arith.constant 0 : i32
    %49 = arith.cmpi ne, %48, %c0_i32_33 : i32
    scf.if %49 {
      %c0_34 = arith.constant 0 : index
      %c0_35 = arith.constant 0 : index
      %50 = vector.load %arg8[%c0_34, %c0_35] : memref<8x1xf32, #tpu.memory_space<vmem>>, vector<8x1xf32>
      %51 = tpu.reciprocal %50 : vector<8x1xf32> -> vector<8x1xf32>
      %c0_36 = arith.constant 0 : index
      %c0_37 = arith.constant 0 : index
      %52 = vector.load %arg9[%c0_36, %c0_37] : memref<8x1xf32, #tpu.memory_space<vmem>>, vector<8x1xf32>
      %53 = arith.mulf %52, %51 : vector<8x1xf32>
      %c0_38 = arith.constant 0 : index
      %c0_39 = arith.constant 0 : index
      %54 = vector.load %arg5[%c0_38, %c0_39] : memref<8x1xf32, #tpu.memory_space<vmem>>, vector<8x1xf32>
      %c0_40 = arith.constant 0 : index
      %c0_41 = arith.constant 0 : index
      %55 = vector.load %arg6[%c0_40, %c0_41] : memref<8x1xf32, #tpu.memory_space<vmem>>, vector<8x1xf32>
      %56 = arith.subf %54, %55 : vector<8x1xf32>
      %57 = arith.addf %53, %56 : vector<8x1xf32>
      %c0_42 = arith.constant 0 : index
      %c0_43 = arith.constant 0 : index
      %58 = vector.load %arg7[%c0_42, %c0_43] : memref<8x1xf32, #tpu.memory_space<vmem>>, vector<8x1xf32>
      %59 = math.log %58 : vector<8x1xf32>
      %60 = arith.addf %57, %59 : vector<8x1xf32>
      %c0_44 = arith.constant 0 : index
      %c0_45 = arith.constant 0 : index
      %61 = vector.load %arg8[%c0_44, %c0_45] : memref<8x1xf32, #tpu.memory_space<vmem>>, vector<8x1xf32>
      %62 = math.log %61 : vector<8x1xf32>
      %63 = arith.subf %60, %62 : vector<8x1xf32>
      %c0_46 = arith.constant 0 : index
      %c0_47 = arith.constant 0 : index
      %64 = vector.load %arg4[%c0_46, %c0_47] : memref<8x1xf32, #tpu.memory_space<vmem>>, vector<8x1xf32>
      tpu.vector_store %arg4[%c0_46, %c0_47], %63 {strides = array<i32>} : memref<8x1xf32, #tpu.memory_space<vmem>>, vector<8x1xf32>,
    } else {
    }
    return
  }
  func.func @transform_0(%arg0: i32, %arg1: i32) -> (i32, i32) {
    %c0_i32 = arith.constant 0 : i32
    return %arg0, %arg1 : i32, i32
  }
  func.func @transform_1(%arg0: i32, %arg1: i32) -> (i32, i32) {
    %c0_i32 = arith.constant 0 : i32
    return %arg0, %arg1 : i32, i32
  }
  func.func @transform_2(%arg0: i32, %arg1: i32) -> (i32, i32) {
    %c0_i32 = arith.constant 0 : i32
    %c0_i32_0 = arith.constant 0 : i32
    return %arg0, %c0_i32 : i32, i32
  }
}

</mosaic_0001>

<bundles_post_ra>
// kernel: tpu_custom_call.1
= control target key start
LH: loop header
LB: loop body
LE: loop exit
PB: predicated region body
PF: predicated region fallthrough
CT: control target
= control target key end

     0   :  { %7 = vsyncpa [#allocation8], 0  ;;  %s769_s0 = inlined_call_operand.hbm [shape: f32[16,32], index: 0, kind: input, shape index: {}]   ;;  %s770_s1 = inlined_call_operand.hbm [shape: f32[16,32], index: 1, kind: input, shape index: {}]   ;;  %s771_s2 = inlined_call_operand.vmem [shape: f32[16,1], index: 2, kind: output, shape index: {}]  }
   0x1   :  { %9 = vsyncpa [#allocation8 + $0x1], 0 }
   0x2   :  { %10 = vsyncpa [#allocation10], 0 }
   0x3   :  { %12 = vsyncpa [#allocation10 + $0x1], 0  ;;  %s627_s9 = smov 0   ;;  %s629_s10 = smov 0  }
   0x4   :  { %s631_s11 = smov 0   ;;  %s633_s12 = smov 0  }
   0x5   :  { %s635_s13 = smov 0   ;;  %s637_s14 = smov 0  }
   0x6 LB: > { %s402_s15 = sadd.s32 4294967295, %s605_s14   ;;  %s30_s16 = sadd.s32 1, %s601_s13  ;;  %s605_s14 = sphi %s637_s14, %s18_s14   ;;  %s601_s13 = sphi %s635_s13, %s780_s13   ;;  %s597_s12 = sphi %s633_s12, %s779_s12   ;;  %s593_s11 = sphi %s631_s11, %s778_s11   ;;  %s589_s10 = sphi %s629_s10, %s777_s10   ;;  %s585_s9 = sphi %s627_s9, %s776_s9  }
   0x7   : > { %p32_p0 = scmp.ge.s32.totalorder %s30_s16, 2  ;;  %s39_s17 = sadd.s32 1, %s593_s11 }
   0x8   : > { %p46_p1 = scmp.ne.s32.totalorder %s593_s11, %s589_s10  ;;  %p47_p2 = scmp.eq.s32.totalorder %s605_s14, 0 }
   0x9   : > { %s782_s16 = smov (%p32_p0, %s30_s16), 0  ;;  %p52_p4 = scmp.ne.s32.totalorder %s589_s10, %s585_s9 }
   0xa   : > { %p663_p3 = por %p47_p2, %p46_p1  ;;  %s34_s19 = ssub.s32 %s601_s13, %s782_s16 }
   0xb   : > { %p53_p5 = scmp.eq.s32.totalorder %s402_s15, 0  ;;  %p37_p6 = scmp.eq.s32.totalorder %s34_s19, 0 }
   0xc   : > { %p427_p8 = scmp.lt.s32.totalorder %s605_s14, 2  ;;  %s679_s22 = sand.u32 1, %s593_s11  }
   0xd   : > { %p670_p7 = por %p53_p5, %p52_p4  ;;  %s407_s23 = sshll.u32 %s601_s13, 7 }
   0xe   : > { %s676_s21 = scalar_select %p37_p6, %s593_s11, %s39_s17  }
   0xf   : > { %s406_s24 = sshll.u32 %s679_s22, 3  ;;  %s140_s27 = scalar_lea.hbm %s769_s0, %s407_s23 }
  0x10   : > { %s134_s28 = scalar_lea.vmem [#allocation7], %s406_s24  ;;  %p688_p9 = pnand %p427_p8, %p663_p3 }
  0x11   : > { %s142_s29 = sshll.u32 %s134_s28, 4  ;;  %p410_p10 = scmp.ge.s32.totalorder %s605_s14, 1  ;;  %s143_s29 = int_to_ptr.vmem [resolvable:$true] %s142_s29 }
  0x12   : > { %p166_p11 = scmp.lt.s32.totalorder %s605_s14, 3  ;;  %s131_s3 = scalar_lea.sflag [#allocation8], %s679_s22 }
  0x13   : > { %p497_p12 = pneg %p688_p9  ;;  %s508_s4 = scalar_lea.vmem %s143_s29, 128 }
  0x14   : > { %p509_p13 = scmp.ne.s32.totalorder %s143_s29, %s508_s4  ;;  %s607_s5 = smov [#allocation7]  }
  0x15   : > { %s513_s6 = sshll.u32 %s607_s5, 4  ;;  %s514_s6 = int_to_ptr.vmem [resolvable:$false] %s513_s6 }
  0x16   : > { %p511_p0 = pnand %p509_p13, %p497_p12  ;;  %s515_s7 = scalar_lea.vmem %s514_s6, 256 }
  0x17   : > { %p516_p2 = scmp.lt.s32.totalorder %s143_s29, %s514_s6  ;;  %p517_p3 = scmp.lt.s32.totalorder %s515_s7, %s508_s4 }
  0x18   : > { %p512_p1 = pneg %p511_p0 }
  0x19   : > { %p518_p4 = por %p517_p3, %p516_p2 }
  0x1b   : > { %p519_p5 = pnand %p518_p4, %p512_p1 }
  0x1d   : > { %522 = shalt.err (!%p519_p5)
}
  0x1e   : > { %423 = dma.hbm_to_vmem [thread:$0]  (!%p688_p9), %s140_s27, 128, %s143_s29, %s131_s3  }
  0x1f   : > { %p706_p6 = pnand %p410_p10, %p166_p11  ;;  %s159_s17 = scalar_lea.hbm %s770_s1, %s407_s23 }
  0x20   : > { %s153_s18 = scalar_lea.vmem [#allocation9], %s406_s24  ;;  %s150_s25 = scalar_lea.sflag [#allocation10], %s679_s22 }
  0x21   : > { %s161_s19 = sshll.u32 %s153_s18, 4  ;;  %s608_s27 = smov [#allocation9]   ;;  %s162_s19 = int_to_ptr.vmem [resolvable:$true] %s161_s19 }
  0x22   : > { %s536_s26 = scalar_lea.vmem %s162_s19, 128  ;;  %s541_s28 = sshll.u32 %s608_s27, 4  ;;  %s542_s28 = int_to_ptr.vmem [resolvable:$false] %s541_s28 }
  0x23   : > { %p537_p8 = scmp.ne.s32.totalorder %s162_s19, %s536_s26  ;;  %s543_s29 = scalar_lea.vmem %s542_s28, 256 }
  0x24   : > { %p544_p10 = scmp.lt.s32.totalorder %s162_s19, %s542_s28  ;;  %p545_p11 = scmp.lt.s32.totalorder %s543_s29, %s536_s26 }
  0x25   : > { %p539_p13 = pnand %p537_p8, %p497_p12 }
  0x26   : > { %p546_p1 = por %p545_p11, %p544_p10 }
  0x27   : > { %p540_p0 = pneg %p539_p13 }
  0x29   : > { %p547_p2 = pnand %p546_p1, %p540_p0 }
  0x2b   : > { %550 = shalt.err (!%p547_p2)
}
  0x2c   : > { %426 = dma.hbm_to_vmem [thread:$0]  (!%p688_p9), %s159_s17, 128, %s162_s19, %s150_s25  }
  0x2d   : > { %170 = sbr.rel (%p706_p6) target bundleno = 511 (0x1ff), region = 28  ;;  %s172_s22 = sand.u32 (!%p706_p6), 1, %s589_s10  }
  0x2e   : > { %s411_s23 = sshll.u32 (!%p706_p6), %s172_s22, 3  ;;  %s173_s24 = scalar_lea.sflag (!%p706_p6), [#allocation8], %s172_s22 }
  0x2f   : > { %s176_s3 = scalar_lea.vmem (!%p706_p6), [#allocation7], %s411_s23 }
  0x32   : > { %576 = dma.done.wait (%p670_p7), %s173_s24, 128  }
  0x33   : > { %578 = vsyncadd (%p670_p7), %s173_s24, 4294967168  ;;  %s182_s4 = scalar_lea.sflag [#allocation10], %s172_s22  ;;  %s185_s5 = scalar_lea.vmem [#allocation9], %s411_s23 }
  0x34   : > { %580 = dma.done.wait (%p670_p7), %s182_s4, 128  }
  0x35   : > { %582 = vsyncadd (%p670_p7), %s182_s4, 4294967168  ;;  %vm218_vm0 = vcmask 7168   ;;  %v609_v0 = vmov -inf   ;;  %vm227_vm1 = vcmask 261120   ;;  %v225_v1 = vld [vmem:[%s185_s5] sm:$0xff]  ;;  %v224_v2 = vld [vmem:[%s176_s3] sm:$0xff] }
  0x36   : > { %220 = vst.msk [vmem:[#allocation3] sm:$0xff] %vm218_vm0, %v609_v0  ;;  %219 = vst.msk [vmem:[#allocation2] sm:$0xff] %vm218_vm0, %v609_v0  ;;  %v253_v3 = vsel %vm227_vm1, %v225_v1, -inf  ;;  %v228_v4 = vsel %vm227_vm1, %v224_v2, -inf  ;;  %v610_v5 = vmov 0   ;;  %v611_v6 = vmov 0.0  }
  0x37   : > { %254 = vmax.xlane.f32.xlu0 %v253_v3  ;;  %479 = vset.pattern.permute.xlu1 %v610_v5  ;;  %222 = vst.msk [vmem:[#allocation5] sm:$0xff] %vm218_vm0, %v611_v6  ;;  %221 = vst.msk [vmem:[#allocation4] sm:$0xff] %vm218_vm0, %v611_v6  ;;  %v277_v21 = vsub.f32 %v225_v1, %v224_v2  ;;  %p210_p7 = scmp.lt.s32.totalorder %s597_s12, 1 }
  0x38   : > { %480 = vset.pattern.permute.xlu0 %v610_v5  ;;  %223 = vst.msk [vmem:[#allocation6] sm:$0xff] %vm218_vm0, %v611_v6 }
  0x39   : > { %s784_s12 = smov (!%p210_p7, %s597_s12), 1 }
  0x3a   : > { %s413_s20 = sshll.u32 %s784_s12, 3 }
  0x3b   : > { %229 = vmax.xlane.f32.xlu0 %v228_v4  ;;  %s213_s7 = scalar_lea.vmem %s771_s2, %s413_s20 }
  0x3d   : > { %v252_v7 = vld [vmem:[#allocation3] sm:$0xff]  ;;  %v226_v10 = vld [vmem:[#allocation2] sm:$0xff] }
  0x3e   : > { %v268_v31 = vld [vmem:[#allocation5] sm:$0xff]  ;;  %v232_v36 = vld [vmem:[#allocation4] sm:$0xff] }
  0x3f   : > { %v275_v35 = vld [vmem:[#allocation6] sm:$0xff] }
  0xc0   : > { %v255_v8 = vpop.xlane.xlu0 %254 }
  0xc1   : > { %v256_v9 = vmax.f32 %v252_v7, %v255_v8 }
  0xc3   : > { %v257_v11 = vsub.f32 %v252_v7, %v256_v9  ;;  %284 = vst.msk [vmem:[#allocation3] sm:$0xff] %vm218_vm0, %v256_v9  ;;  %262 = vperm.xlu1 %479, %v256_v9  }
  0xc4   : > { %v230_v12 = vpop.xlane.xlu0 %229 }
  0xc5   : > { %v231_v13 = vmax.f32 %v226_v10, %v230_v12  ;;  %v258_v28 = vmul.f32 1.442695, %v257_v11 }
  0xc7   : > { %v233_v14 = vsub.f32 %v226_v10, %v231_v13  ;;  %251 = vst.msk [vmem:[#allocation2] sm:$0xff] %vm218_vm0, %v231_v13  ;;  %239 = vperm.xlu1 %479, %v231_v13  }
  0xc9   : > { %v234_v29 = vmul.f32 1.442695, %v233_v14 }
  0xca   : > { %v293_v50 = vld [vmem:[#allocation3] sm:$0xff] }
  0xce   : > { %v292_v47 = vld [vmem:[#allocation2] sm:$0xff] }
  0xcf   : > { %v294_v52 = vsub.f32 %v292_v47, %v293_v50 }
 0x13e   : > { %v263_v15 = vpop.permute.xlu1 %262 }
 0x13f   : > { %v265_v16 = vsub.f32 %v225_v1, %v263_v15 }
 0x141   : > { %v266_v17 = vmul.f32 1.442695, %v265_v16 }
 0x142   : > { %v240_v18 = vpop.permute.xlu1 %239 }
 0x143   : > { %481 = vpow2.f32 %v266_v17  ;;  %v242_v19 = vsub.f32 %v224_v2, %v240_v18 }
 0x145   : > { %v243_v20 = vmul.f32 1.442695, %v242_v19 }
 0x147   : > { %483 = vpow2.f32 %v243_v20 }
 0x148   : > { %485 = vpow2.f32 %v258_v28 }
 0x149   : > { %487 = vpow2.f32 %v234_v29 }
 0x150   : > { %v482_v22 = vpop.eup %481 }
 0x151   : > { %v270_v23 = vsel %vm227_vm1, %v482_v22, 0.0  ;;  %v278_v24 = vmul.f32 %v482_v22, %v277_v21 }
 0x152   : > { %271 = vadd.xlane.f32.xlu0 %v270_v23 }
 0x153   : > { %v279_v26 = vsel %vm227_vm1, %v278_v24, 0.0 }
 0x154   : > { %v484_v25 = vpop.eup %483 }
 0x155   : > { %v245_v27 = vsel %vm227_vm1, %v484_v25, 0.0  ;;  %v486_v30 = vpop.eup %485 }
 0x156   : > { %280 = vadd.xlane.f32.xlu0 %v279_v26  ;;  %246 = vadd.xlane.f32.xlu1 %v245_v27  ;;  %v269_v32 = vmul.f32 %v486_v30, %v268_v31  ;;  %v488_v33 = vpop.eup %487  ;;  %v276_v38 = vmul.f32 %v486_v30, %v275_v35 }
 0x157   : > { %v236_v39 = vmul.f32 %v488_v33, %v232_v36 }
 0x1db   : > { %v272_v34 = vpop.xlane.xlu0 %271 }
 0x1dc   : > { %v273_v37 = vadd.f32 %v272_v34, %v269_v32 }
 0x1de   : > { %274 = vst.msk [vmem:[#allocation5] sm:$0xff] %vm218_vm0, %v273_v37 }
 0x1df   : > { %v281_v40 = vpop.xlane.xlu0 %280  ;;  %v247_v41 = vpop.xlane.xlu1 %246 }
 0x1e0   : > { %v282_v42 = vadd.f32 %v281_v40, %v276_v38  ;;  %v248_v43 = vadd.f32 %v247_v41, %v236_v39 }
 0x1e2   : > { %283 = vst.msk [vmem:[#allocation6] sm:$0xff] %vm218_vm0, %v282_v42  ;;  %250 = vst.msk [vmem:[#allocation4] sm:$0xff] %vm218_vm0, %v248_v43 }
 0x1e5   : > { %v288_v44 = vld [vmem:[#allocation5] sm:$0xff] }
 0x1e6   : > { %489 = vrcp.f32 %v288_v44 }
 0x1e7   : > { %491 = vlog2.f32 %v288_v44 }
 0x1e9   : > { %v296_v45 = vld [vmem:[#allocation4] sm:$0xff]  ;;  %v290_v48 = vld [vmem:[#allocation6] sm:$0xff] }
 0x1ea   : > { %493 = vlog2.f32 %v296_v45 }
 0x1f3   : > { %v490_v46 = vpop.eup %489 }
 0x1f4   : > { %v291_v49 = vmul.f32 %v490_v46, %v290_v48  ;;  %v492_v51 = vpop.eup %491 }
 0x1f5   : > { %v301_v56 = vmul.f32 0.6931472, %v492_v51 }
 0x1f6   : > { %v295_v54 = vadd.f32 %v294_v52, %v291_v49 }
 0x1f7   : > { %v494_v53 = vpop.eup %493 }
 0x1f8   : > { %v298_v55 = vmul.f32 0.6931472, %v494_v53 }
 0x1fa   : > { %v299_v57 = vadd.f32 %v298_v55, %v295_v54 }
 0x1fc   : > { %v302_v58 = vsub.f32 %v299_v57, %v301_v56 }
 0x1fe   : > { %303 = vst.msk [vmem:[%s213_s7] sm:$0xff] %vm218_vm0, %v302_v58 }
 0x1ff PF: > { %s18_s14 = sadd.s32 1, %s605_s14   ;;  %s776_s9 = smov %s589_s10 }
 0x200   : > { %p15_p9 = scmp.ge.s32.totalorder %s18_s14, 4   ;;  %s777_s10 = smov %s593_s11 }
 0x201   : > { %s778_s11 = smov %s676_s21  ;;  %s779_s12 = smov %s601_s13 }
 0x202   : > { %s780_s13 = smov %s782_s16  ;;  %17 = sbr.rel (!%p15_p9) target bundleno = 6 (0x6), region = 89 }
 0x207   :  { %323 = vsyncpa [#allocation8], 1 }
 0x208   :  { %325 = vsyncpa [#allocation8 + $0x1], 1 }
 0x209   :  { %326 = vsyncpa [#allocation10], 1 }
 0x20a   :  { %328 = vsyncpa [#allocation10 + $0x1], 1 }

</bundles_post_ra>
